<compile_context>
chip_gen: v7x
topology: tpu7x:2x2x1
jax: 0.10.0
libtpu: 0.0.40
codegen_flags: <defaults>
</compile_context>

<pallas_src>
import jax
import jax.numpy as jnp
from jax.experimental import pallas as pl
from jax.experimental.pallas import tpu as pltpu


# ------------------------------ Pallas kernel --------------------------------

def _agg_scale_bias_relu_kernel(adj_ref, xw_ref, rs_ref, b_ref, o_ref, acc_ref):
    """One (tm, Hp) output stripe of relu(rs * (adj @ xw) + b).

    Grid = (row_tiles, k_tiles); K reduction is the innermost axis, the output
    stripe stays resident in the f32 VMEM accumulator across it.
    """
    k = pl.program_id(1)

    @pl.when(k == 0)
    def _init():
        acc_ref[...] = jnp.zeros_like(acc_ref)

    # bf16 x bf16 -> f32 accumulate on the MXU.
    acc_ref[...] += jnp.dot(adj_ref[...], xw_ref[...],
                            preferred_element_type=jnp.float32)

    @pl.when(k == pl.num_programs(1) - 1)
    def _finalize():
        h = acc_ref[...] * rs_ref[...] + b_ref[...]      # f32 row scale + bias
        o_ref[...] = jnp.maximum(h, 0.0).astype(o_ref.dtype)


# Tile candidates. Row tiles (sublane axis, bf16-packed) are multiples of 16;
# contraction tiles are multiples of 128 (lane axis of the adjacency tile).
_ROW_TILES = (512, 256, 128, 64, 32, 16)
_K_TILES = (2048, 1024, 512, 256, 128)
_VMEM_LIMIT = 32 * 1024 * 1024       # explicit: above v5e's 16 MiB scoped default


def _round_up(x, m):
    return ((x + m - 1) // m) * m


def _pick_tile(size, candidates):
    """Pick the tile that minimizes round-up padding; ties -> largest tile."""
    best_pad, best_t = None, None
    for t in candidates:
        p = _round_up(size, t)
        if best_pad is None or p < best_pad or (p == best_pad and t > best_t):
            best_pad, best_t = p, t
    return best_pad, best_t


def _row_tiles(R):
    return _pick_tile(_round_up(R, 16), _ROW_TILES)      # bf16 packs 16 rows/vreg


def _k_tiles(K):
    return _pick_tile(_round_up(K, 128), _K_TILES)


def _pad2d(x, rows, cols, dtype):
    r, c = x.shape
    return jnp.pad(x, ((0, rows - r), (0, cols - c))).astype(dtype)


def _agg_scale_bias_relu(adj_p, xw_p, rs_p, b_p, tm, tk):
    """Tiled Pallas call: relu(rs_p * (adj_p @ xw_p) + b_p) -> bf16."""
    Rp, Kp = adj_p.shape
    _, Hp = xw_p.shape                 # full padded width: adjacency read once
    grid = (Rp // tm, Kp // tk)
    return pl.pallas_call(
        _agg_scale_bias_relu_kernel,
        out_shape=jax.ShapeDtypeStruct((Rp, Hp), jnp.bfloat16),
        grid=grid,
        in_specs=[
            pl.BlockSpec((tm, tk), lambda i, k: (i, k)),   # adjacency counts (bf16)
            pl.BlockSpec((tk, Hp), lambda i, k: (k, 0)),   # projected feats (bf16)
            pl.BlockSpec((tm, 1), lambda i, k: (i, 0)),    # 1/sqrt(deg_in) rows (f32)
            pl.BlockSpec((1, Hp), lambda i, k: (0, 0)),    # bias (f32, lane-dense)
        ],
        out_specs=pl.BlockSpec((tm, Hp), lambda i, k: (i, 0)),
        scratch_shapes=[pltpu.VMEM((tm, Hp), jnp.float32)],
        compiler_params=pltpu.CompilerParams(
            dimension_semantics=("parallel", "arbitrary"),
            vmem_limit_bytes=_VMEM_LIMIT),
    )(adj_p, xw_p, rs_p, b_p)


def gcn_stack(adj_counts, deg_in, deg_out, h, layers):
    """GCN layer stack: one Pallas aggregation kernel per layer.

    The adjacency (raw integer edge counts -> exact in bf16) is padded + cast
    ONCE and reused for every layer; degree normalization is folded into the
    projected features (columns, wrapper) and the kernel epilogue (rows).
    """
    N = adj_counts.shape[0]
    Rp, tm = _row_tiles(N)
    Kp, tk = _k_tiles(N)

    adj_p = _pad2d(adj_counts, Rp, Kp, jnp.bfloat16)
    inv_sqrt_in = jax.lax.rsqrt(jnp.maximum(deg_in, 1.0))
    inv_sqrt_out = jax.lax.rsqrt(jnp.maximum(deg_out, 1.0))
    rs_p = _pad2d(inv_sqrt_in.reshape(-1, 1).astype(jnp.float32),
                  Rp, 1, jnp.float32)

    for w, b in layers:
        H = w.shape[1]
        Hp = _round_up(H, 128)     # TN == full padded width (typical GNN H <= 512)
        # Tiny (N, F) @ (F, H) projection in f32 with the column norm folded in.
        xw = jnp.dot(h, w.astype(jnp.float32)) * inv_sqrt_out[:, None]
        xw_p = _pad2d(xw, Kp, Hp, jnp.bfloat16)
        b_p = _pad2d(b.reshape(1, -1).astype(jnp.float32), 1, Hp, jnp.float32)
        h = _agg_scale_bias_relu(adj_p, xw_p, rs_p, b_p, tm, tk)[:N, :H]
    return h


# ------------------------------- GNN forward ---------------------------------

def init_gnn_params(key, in_node_feats, in_edge_feats, gcn_hidden_feats):
    """Deterministic Glorot-style init of all linear layers."""
    params = {}
    k = key

    def glorot(k, shape):
        fan_in, fan_out = shape
        scale = jnp.sqrt(6.0 / (fan_in + fan_out))
        return jax.random.uniform(k, shape, jnp.float32, -scale, scale)

    k, sub = jax.random.split(k)
    din = in_node_feats + in_edge_feats
    params["edge_conv_w"] = glorot(sub, (din, gcn_hidden_feats[0]))
    params["edge_conv_b"] = jnp.zeros((gcn_hidden_feats[0],), jnp.float32)

    gcn_layers = []
    feats = [gcn_hidden_feats[0]] + list(gcn_hidden_feats[1:])
    for i in range(len(feats) - 1):
        k, sub = jax.random.split(k)
        gcn_layers.append(
            (glorot(sub, (feats[i], feats[i + 1])),
             jnp.zeros((feats[i + 1],), jnp.float32)))
    params["gcn_layers"] = gcn_layers
    return params


@jax.jit
def gnn_forward(params, src, dst, node_feats, edge_feats):
    """Forward pass of GNN. Returns (N, gcn_hidden_feats[-1]) node features."""
    N = node_feats.shape[0]

    # --- InputInitializer: per-edge concat(src-node feats, edge feats) ------
    e_repr = jnp.concatenate([node_feats[src], edge_feats], axis=1)   # (M, D0+D1)

    # --- EdgeGraphConv: sum incoming edge reprs per dst node, Linear + ReLU -
    # O(M*D) segment-sum instead of a dense (N, M) one-hot matmul.
    # TODO(synk): scalar-prefetch Pallas scatter kernel for very large graphs.
    agg = jax.ops.segment_sum(e_repr, dst, num_segments=N)            # (N, D0+D1)
    h = jnp.maximum(jnp.dot(agg, params["edge_conv_w"])
                    + params["edge_conv_b"], 0.0)

    # --- GCN stack: degree-normalized aggregation + Linear + ReLU (Pallas) --
    adj = jnp.zeros((N, N), jnp.float32).at[dst, src].add(1.0)  # adj[v,u] = #edges u->v
    deg_in = adj.sum(axis=1)
    deg_out = adj.sum(axis=0)

    h = gcn_stack(adj, deg_in, deg_out, h, params["gcn_layers"])
    return h.astype(jnp.float32)


# Pure-jnp f32 reference of the same math, for a correctness check.
def _gnn_forward_ref(params, src, dst, node_feats, edge_feats):
    N = node_feats.shape[0]
    e_repr = jnp.concatenate([node_feats[src], edge_feats], axis=1)
    a_dst = (dst[None, :] == jnp.arange(N)[:, None]).astype(jnp.float32)
    h = jnp.maximum(a_dst @ e_repr @ params["edge_conv_w"]
                    + params["edge_conv_b"], 0.0)
    adj = jnp.zeros((N, N), jnp.float32).at[dst, src].add(1.0)
    deg_in = jnp.maximum(adj.sum(axis=1), 1.0)
    deg_out = jnp.maximum(adj.sum(axis=0), 1.0)
    adj_hat = adj / jnp.sqrt(deg_in)[:, None] / jnp.sqrt(deg_out)[None, :]
    for w, b in params["gcn_layers"]:
        h = jnp.maximum(adj_hat @ h @ w + b, 0.0)
    return h


# ----------------------------------- main -------------------------------------

if __name__ == "__main__":
    in_node_feats = 16
    in_edge_feats = 8
    gcn_hidden_feats = [32, 32]

    N, M = 8, 16  # nodes, directed edges (small synthetic graph)

    key = jax.random.PRNGKey(0)
    k_node, k_edge, k_param = jax.random.split(key, 3)

    node_feats = jax.random.normal(k_node, (N, in_node_feats), jnp.float32)
    edge_feats = jax.random.normal(k_edge, (M, in_edge_feats), jnp.float32)

    # Deterministic edge list.
    src = jnp.arange(M, dtype=jnp.int32) % N
    dst = (jnp.arange(M, dtype=jnp.int32) * 3 + 1) % N

    params = init_gnn_params(k_param, in_node_feats, in_edge_feats,
                             gcn_hidden_feats)

    out = gnn_forward(params, src, dst, node_feats, edge_feats)
    out = jax.block_until_ready(out)
    assert out.shape == (N, gcn_hidden_feats[-1]), out.shape

    ref = jax.block_until_ready(
        _gnn_forward_ref(params, src, dst, node_feats, edge_feats))
    # Adjacency counts are exact (bf16 integers) and normalization is applied
    # in f32, so only the bf16 feature stream / bf16 output rounding remains.
    assert jnp.allclose(out, ref, atol=5e-2, rtol=5e-2), \
        float(jnp.max(jnp.abs(out - ref)))

    print("KERNEL_OK")
</pallas_src>

<mosaic_0001>
module attributes {stable_mosaic.version = 11 : i64} {
  func.func private @main(%arg0: i32) attributes {dimension_semantics = [#tpu.dimension_semantics<core_parallel>], iteration_bounds = array<i64: 2>, tpu.core_type = #tpu.core_type<sc_scalar_subcore>, window_params = []} {
    return
  }
}

module attributes {stable_mosaic.version = 11 : i64} {
  func.func private @main(%arg0: i32) attributes {dimension_semantics = [#tpu.dimension_semantics<core_parallel>], iteration_bounds = array<i64: 2>, tpu.core_type = #tpu.core_type<sc_scalar_subcore>, window_params = []} {
    return
  }
}

module attributes {stable_mosaic.version = 11 : i64} {
  func.func @_agg_scale_bias_relu_kernel(%arg0: i32, %arg1: i32, %arg2: memref<16x128xbf16, #tpu.memory_space<vmem>>, %arg3: memref<128x128xbf16, #tpu.memory_space<vmem>>, %arg4: memref<16x1xf32, #tpu.memory_space<vmem>>, %arg5: memref<1x128xf32, #tpu.memory_space<vmem>>, %arg6: memref<16x128xbf16, #tpu.memory_space<vmem>>, %arg7: memref<16x128xf32, #tpu.memory_space<vmem>>) attributes {dimension_semantics = [#tpu.dimension_semantics<parallel>, #tpu.dimension_semantics<arbitrary>], iteration_bounds = array<i64: 1, 1>, scalar_prefetch = 0 : i64, scratch_operands = 1 : i64, tpu.core_type = #tpu.core_type<tc>, window_params = [{transform_indices = @transform_0, window_bounds = array<i64: 16, 128>}, {transform_indices = @transform_1, window_bounds = array<i64: 128, 128>}, {transform_indices = @transform_2, window_bounds = array<i64: 16, 1>}, {pipeline_mode = #tpu.pipeline_mode<synchronous>, transform_indices = @transform_3, window_bounds = array<i64: 1, 128>}, {transform_indices = @transform_4, window_bounds = array<i64: 16, 128>}]} {
    %c0_i32 = arith.constant 0 : i32
    %0 = arith.cmpi eq, %arg1, %c0_i32 : i32
    %1 = arith.extui %0 : i1 to i32
    %c0_i32_0 = arith.constant 0 : i32
    %2 = arith.cmpi ne, %1, %c0_i32_0 : i32
    scf.if %2 {
      %cst_10 = arith.constant 0.000000e+00 : f32
      %12 = vector.broadcast %cst_10 : f32 to vector<16x128xf32>
      %c0_11 = arith.constant 0 : index
      %c0_12 = arith.constant 0 : index
      %13 = vector.load %arg7[%c0_11, %c0_12] : memref<16x128xf32, #tpu.memory_space<vmem>>, vector<16x128xf32>
      tpu.vector_store %arg7[%c0_11, %c0_12], %12 {strides = array<i32>} : memref<16x128xf32, #tpu.memory_space<vmem>>, vector<16x128xf32>,
    } else {
    }
    %c0 = arith.constant 0 : index
    %c0_1 = arith.constant 0 : index
    %3 = vector.load %arg7[%c0, %c0_1] : memref<16x128xf32, #tpu.memory_space<vmem>>, vector<16x128xf32>
    %c0_2 = arith.constant 0 : index
    %c0_3 = arith.constant 0 : index
    %4 = vector.load %arg2[%c0_2, %c0_3] : memref<16x128xbf16, #tpu.memory_space<vmem>>, vector<16x128xbf16>
    %c0_4 = arith.constant 0 : index
    %c0_5 = arith.constant 0 : index
    %5 = vector.load %arg3[%c0_4, %c0_5] : memref<128x128xbf16, #tpu.memory_space<vmem>>, vector<128x128xbf16>
    %cst = arith.constant dense<0.000000e+00> : vector<16x128xf32>
    %6 = tpu.matmul %4, %5, %cst {dimension_numbers = #tpu.dot_dimension_numbers<[1], [0], [0], [1], [0, 0, 1, 1], [], []>} : vector<16x128xbf16>, vector<128x128xbf16>, vector<16x128xf32> -> vector<16x128xf32>
    %7 = arith.addf %3, %6 : vector<16x128xf32>
    %c0_6 = arith.constant 0 : index
    %c0_7 = arith.constant 0 : index
    %8 = vector.load %arg7[%c0_6, %c0_7] : memref<16x128xf32, #tpu.memory_space<vmem>>, vector<16x128xf32>
    tpu.vector_store %arg7[%c0_6, %c0_7], %7 {strides = array<i32>} : memref<16x128xf32, #tpu.memory_space<vmem>>, vector<16x128xf32>,
    %c0_i32_8 = arith.constant 0 : i32
    %9 = arith.cmpi eq, %arg1, %c0_i32_8 : i32
    %10 = arith.extui %9 : i1 to i32
    %c0_i32_9 = arith.constant 0 : i32
    %11 = arith.cmpi ne, %10, %c0_i32_9 : i32
    scf.if %11 {
      %c0_10 = arith.constant 0 : index
      %c0_11 = arith.constant 0 : index
      %12 = vector.load %arg7[%c0_10, %c0_11] : memref<16x128xf32, #tpu.memory_space<vmem>>, vector<16x128xf32>
      %c0_12 = arith.constant 0 : index
      %c0_13 = arith.constant 0 : index
      %13 = vector.load %arg4[%c0_12, %c0_13] : memref<16x1xf32, #tpu.memory_space<vmem>>, vector<16x1xf32>
      %14 = vector.broadcast %13 : vector<16x1xf32> to vector<16x128xf32>
      %15 = arith.mulf %12, %14 : vector<16x128xf32>
      %c0_14 = arith.constant 0 : index
      %c0_15 = arith.constant 0 : index
      %16 = vector.load %arg5[%c0_14, %c0_15] : memref<1x128xf32, #tpu.memory_space<vmem>>, vector<1x128xf32>
      %17 = vector.broadcast %16 : vector<1x128xf32> to vector<16x128xf32>
      %18 = arith.addf %15, %17 : vector<16x128xf32>
      %cst_16 = arith.constant 0.000000e+00 : f32
      %19 = vector.broadcast %cst_16 : f32 to vector<16x128xf32>
      %20 = arith.maximumf %18, %19 : vector<16x128xf32>
      %21 = arith.truncf %20 : vector<16x128xf32> to vector<16x128xbf16>
      %c0_17 = arith.constant 0 : index
      %c0_18 = arith.constant 0 : index
      %22 = vector.load %arg6[%c0_17, %c0_18] : memref<16x128xbf16, #tpu.memory_space<vmem>>, vector<16x128xbf16>
      tpu.vector_store %arg6[%c0_17, %c0_18], %21 {strides = array<i32>} : memref<16x128xbf16, #tpu.memory_space<vmem>>, vector<16x128xbf16>,
    } else {
    }
    return
  }
  func.func @transform_0(%arg0: i32, %arg1: i32) -> (i32, i32) {
    %c0_i32 = arith.constant 0 : i32
    return %arg0, %arg1 : i32, i32
  }
  func.func @transform_1(%arg0: i32, %arg1: i32) -> (i32, i32) {
    %c0_i32 = arith.constant 0 : i32
    %c0_i32_0 = arith.constant 0 : i32
    return %arg1, %c0_i32 : i32, i32
  }
  func.func @transform_2(%arg0: i32, %arg1: i32) -> (i32, i32) {
    %c0_i32 = arith.constant 0 : i32
    %c0_i32_0 = arith.constant 0 : i32
    return %arg0, %c0_i32 : i32, i32
  }
  func.func @transform_3(%arg0: i32, %arg1: i32) -> (i32, i32) {
    %c0_i32 = arith.constant 0 : i32
    %c0_i32_0 = arith.constant 0 : i32
    %c0_i32_1 = arith.constant 0 : i32
    return %c0_i32, %c0_i32_0 : i32, i32
  }
  func.func @transform_4(%arg0: i32, %arg1: i32) -> (i32, i32) {
    %c0_i32 = arith.constant 0 : i32
    %c0_i32_0 = arith.constant 0 : i32
    return %arg0, %c0_i32 : i32, i32
  }
}

</mosaic_0001>

<bundles_post_ra>
// kernel: gnn_forward.1
= control target key start
LH: loop header
LB: loop body
LE: loop exit
PB: predicated region body
PF: predicated region fallthrough
CT: control target
= control target key end

     0   :  { %v248_v0 = vmov 0.0   ;;  %vm249_vm0 = vmmov 0   ;;  %v250_v2 = vmov 0   ;;  %s315_s1 = inlined_call_operand.vmem [shape: bf16[128,128], index: 1, kind: input, shape index: {}]   ;;  %s316_s2 = inlined_call_operand.vmem [shape: f32[16,1], index: 2, kind: input, shape index: {}]   ;;  %s317_s0 = inlined_call_operand.vmem [shape: bf16[16,128], index: 0, kind: input, shape index: {}]   ;;  %s318_s3 = inlined_call_operand.vmem [shape: f32[1,128], index: 3, kind: input, shape index: {}]   ;;  %s319_s4 = inlined_call_operand.vmem [shape: bf16[16,128], index: 4, kind: output, shape index: {}]  }
   0x1   :  { %215 = vmatprep.subr.bf16.mxu0 %v248_v0  ;;  %v239_v1 = vld [vmem:[%s315_s1] sm:$0xff]   ;;  %231 = vmatprep.mubr.msk.bf16.mxu0 %vm249_vm0, %v248_v0  ;;  %v240_v3 = vld [vmem:[%s315_s1 + $0x8] sm:$0xff]   ;;  %v241_v4 = vld [vmem:[%s315_s1 + $0x10] sm:$0xff]  }
   0x2   :  { %238 = vset.pattern.permute.xlu0 %v250_v2  ;;  %216 = vmatpush3.bf16.msra.mxu0 %v239_v1  ;;  %v148_v5 = vld [vmem:[%s316_s2] sm:$0xff]  ;;  %v242_v6 = vld [vmem:[%s315_s1 + $0x18] sm:$0xff]   ;;  %v149_v7 = vld [vmem:[%s316_s2 + $0x8] sm:$0xff] }
   0x3   :  { %217 = vmatprep.subr.bf16.mxu0 %v248_v0  ;;  %152 = vperm.xlu0 %238, %v148_v5   ;;  %v243_v8 = vld [vmem:[%s315_s1 + $0x20] sm:$0xff]   ;;  %v244_v9 = vld [vmem:[%s315_s1 + $0x28] sm:$0xff]   ;;  %v245_v10 = vld [vmem:[%s315_s1 + $0x30] sm:$0xff]  }
   0x4   :  { %v246_v11 = vld [vmem:[%s315_s1 + $0x38] sm:$0xff]   ;;  %v247_v12 = vld [vmem:[%s317_s0] sm:$0xff]  }
   0x5   :  { %v196_v15 = vld [vmem:[%s318_s3] ss:$0 sm:$0xff] }
   0x6   :  { %218 = vmatpush3.bf16.msra.mxu0 %v240_v3 }
   0x7   :  { %219 = vmatprep.subr.bf16.mxu0 %v248_v0  ;;  %157 = vperm.xlu0 %238, %v149_v7  }
   0xa   :  { %220 = vmatpush3.bf16.msra.mxu0 %v241_v4 }
   0xb   :  { %221 = vmatprep.subr.bf16.mxu0 %v248_v0 }
   0xe   :  { %222 = vmatpush3.bf16.msra.mxu0 %v242_v6 }
   0xf   :  { %223 = vmatprep.subr.bf16.mxu0 %v248_v0 }
  0x12   :  { %224 = vmatpush3.bf16.msra.mxu0 %v243_v8 }
  0x13   :  { %225 = vmatprep.subr.bf16.mxu0 %v248_v0 }
  0x16   :  { %226 = vmatpush3.bf16.msra.mxu0 %v244_v9 }
  0x17   :  { %227 = vmatprep.subr.bf16.mxu0 %v248_v0 }
  0x1a   :  { %228 = vmatpush3.bf16.msra.mxu0 %v245_v10 }
  0x1b   :  { %229 = vmatprep.subr.bf16.mxu0 %v248_v0 }
  0x1e   :  { %230 = vmatpush3.bf16.msra.mxu0 %v246_v11 }
  0x21   :  { %232 = vmatmul.mubr.bf16.vlgmr.msra.gmra.mrb[0].mxu0 %v247_v12 }
  0x82   :  { %v153_v13 = vpop.permute.xlu0 %152 }
  0x86   :  { %v158_v18 = vpop.permute.xlu0 %157 }
  0xf4   :  { %v132_v14 = vpop.f32.mrb[0].mxu0 }
  0xf5   :  { %v160_v16 = vmul.f32 %v153_v13, %v132_v14  ;;  %v233_v17 = vpop.f32.mrb[1].mxu0 }
  0xf6   :  { %v135_v19 = vpop.f32.mrb[2].mxu0 }
  0xf7   :  { %v169_v20 = vadd.f32 %v196_v15, %v160_v16  ;;  %v161_v21 = vmul.f32 %v158_v18, %v135_v19  ;;  %v234_v22 = vpop.f32.mrb[3].mxu0 }
  0xf9   :  { %v170_v23 = vadd.f32 %v196_v15, %v161_v21  ;;  %v171_v24 = vmax.f32 %v169_v20, 0.0 }
  0xfb   :  { %v172_v25 = vmax.f32 %v170_v23, 0.0 }
  0xfd   :  { %v204_v26 = vpack.c.bf16 %v172_v25, %v171_v24 }
  0xff   :  { %205 = vst [vmem:[%s319_s4] sm:$0xff] %v204_v26  }

</bundles_post_ra>
